<compile_context>
chip_gen: v7x
topology: tpu7x:2x2x1
jax: 0.10.0
libtpu: 0.0.40
codegen_flags: <defaults>
</compile_context>

<pallas_src>
import functools

import jax
import jax.numpy as jnp
from jax.experimental import pallas as pl
from jax.experimental.pallas import tpu as pltpu

_LANE = 128
_SUBLANE = 8
_BLOCK_ROWS_DEFAULT = 2048
_MIN_KERNEL_ELEMS = _SUBLANE * _LANE   # below this a fused XLA reduction wins


def _num_tensorcores() -> int:
    """Best-effort TensorCores-per-device count (megacore chips -> 2)."""
    try:
        kind = getattr(jax.devices()[0], "device_kind", "").lower()
    except Exception:
        return 1
    for tag in ("v4", "v5p", "v7"):
        if tag in kind:
            return 2
    return 1


def _wmse_partials_kernel(p_ref, t_ref, w_ref, acc_ref, *,
                          block_rows, inner, rows, num_blocks, num_shards):
    """Accumulate (3, 8, 128) partial sums for one shard of the row range.

    Planes: 0 = sum(scale where w > 0), 1 = count(w > 0), 2 = sum(|scale|).
    """
    # Zero this shard's resident accumulator block on its first inner step.
    @pl.when(pl.program_id(1) == 0)
    def _():
        acc_ref[...] = jnp.zeros_like(acc_ref)

    blk = pl.program_id(0) * inner + pl.program_id(1)

    has_tail = (rows % block_rows) != 0            # static: last block ragged
    has_phantom = num_shards * inner > num_blocks  # static: clamped logical blocks

    def fold(x):
        # (block_rows, 128) -> (8, 128): pure vreg-wise VPU adds (no XLU).
        return jnp.sum(x.reshape(block_rows // _SUBLANE, _SUBLANE, _LANE),
                       axis=0)

    def accumulate(mask_tail):
        # Stream native dtype, cast in VMEM (free on v6e/v7x, required on v5e).
        p = p_ref[...].astype(jnp.float32)
        t = t_ref[...].astype(jnp.float32)
        w = w_ref[...].astype(jnp.float32)

        d = p - t
        scale = w * (d * d)
        pos = w > 0.0                # elements selected by masked_select(w > 0)
        abs_scale = jnp.abs(scale)   # sum(|scale|) > 0  <=>  nonzero(scale) exists

        if mask_tail:
            # Ragged last block: mask rows past the end of the tensor so the
            # garbage/NaN tail of the partially-filled VMEM block is inert.
            row0 = blk * block_rows
            row_ids = row0 + jax.lax.broadcasted_iota(
                jnp.int32, (block_rows, _LANE), 0)
            valid = row_ids < rows
            pos = jnp.logical_and(pos, valid)
            abs_scale = jnp.where(valid, abs_scale, 0.0)

        masked_scale = jnp.where(pos, scale, 0.0)   # select -> garbage/NaN inert

        acc_ref[0, :, :] += fold(masked_scale)
        acc_ref[1, :, :] += fold(pos.astype(jnp.float32))
        acc_ref[2, :, :] += fold(abs_scale)

    if has_tail:
        # Only the last real block pays for the row mask; phantom (clamped)
        # logical blocks (blk >= num_blocks) skip compute entirely.
        @pl.when(blk < num_blocks - 1)
        def _():
            accumulate(False)

        @pl.when(blk == num_blocks - 1)
        def _():
            accumulate(True)
    elif has_phantom:
        @pl.when(blk < num_blocks)
        def _():
            accumulate(False)
    else:
        accumulate(False)


def _wmse_jnp(pred, target, weights):
    """Fused-XLA path for tiny or lane-ragged inputs (identical semantics)."""
    p = pred.astype(jnp.float32)
    t = target.astype(jnp.float32)
    w = weights.astype(jnp.float32)
    scale = w * (p - t) ** 2
    pos = w > 0.0
    sum_masked = jnp.sum(jnp.where(pos, scale, 0.0))
    cnt_pos = jnp.sum(pos.astype(jnp.float32))
    sum_abs = jnp.sum(jnp.abs(scale))
    masked_mean = sum_masked / cnt_pos   # NaN if no positive weights (matches torch)
    return jnp.where(sum_abs > 0.0, masked_mean, jnp.float32(0.0))


@functools.partial(jax.jit, static_argnames=("block_rows",))
def weighted_mse_loss(lsds_prediction, lsds_target, lsds_weights, *,
                      block_rows=_BLOCK_ROWS_DEFAULT):
    assert lsds_prediction.shape == lsds_target.shape == lsds_weights.shape
    n = lsds_prediction.size

    # TODO(synk): lane-ragged flat sizes (n % 128 != 0) use the fused XLA path
    # instead of an in-kernel lane mask; real LSD shapes are 128-divisible.
    if n < _MIN_KERNEL_ELEMS or n % _LANE != 0:
        return _wmse_jnp(lsds_prediction, lsds_target, lsds_weights)

    rows = n // _LANE
    # Largest multiple-of-8 row block that fits the tensor (<= block_rows).
    block_rows = max(_SUBLANE, min(block_rows, (rows // _SUBLANE) * _SUBLANE))
    num_blocks = pl.cdiv(rows, block_rows)

    # Shard row-blocks across TensorCores only on multi-core chips (v7x et al.);
    # on single-core v5e/v6e this collapses to 1 shard (no phantom blocks, no
    # forced masking).
    num_shards = 2 if (_num_tensorcores() >= 2 and num_blocks >= 2) else 1
    inner = pl.cdiv(num_blocks, num_shards)
    needs_clamp = num_shards * inner > num_blocks

    # Free reshape to a lane-dense slab; no padding copy in HBM.
    p2 = lsds_prediction.reshape(rows, _LANE)
    t2 = lsds_target.reshape(rows, _LANE)
    w2 = lsds_weights.reshape(rows, _LANE)

    def in_map(s, i):
        blk = s * inner + i
        if needs_clamp:
            # Out-of-range logical blocks re-read the last real block (same
            # index as the previous step -> pipeline elides the re-fetch);
            # their compute is skipped in-kernel.
            blk = jnp.minimum(blk, num_blocks - 1)
        return (blk, 0)

    in_spec = pl.BlockSpec((block_rows, _LANE), in_map)
    out_spec = pl.BlockSpec((3, _SUBLANE, _LANE), lambda s, i: (s, 0, 0))

    kernel = functools.partial(
        _wmse_partials_kernel,
        block_rows=block_rows, inner=inner, rows=rows,
        num_blocks=num_blocks, num_shards=num_shards)

    partials = pl.pallas_call(
        kernel,
        out_shape=jax.ShapeDtypeStruct((3 * num_shards, _SUBLANE, _LANE),
                                       jnp.float32),
        grid_spec=pltpu.PrefetchScalarGridSpec(
            num_scalar_prefetch=0,
            grid=(num_shards, inner),
            in_specs=[in_spec, in_spec, in_spec],
            out_specs=out_spec,
        ),
        compiler_params=pltpu.CompilerParams(
            dimension_semantics=("parallel", "arbitrary")),
    )(p2, t2, w2)

    # Tiny final cross-lane reduction + data-dependent branch: JAX scalar glue.
    sums = jnp.sum(partials.reshape(num_shards, 3, -1), axis=(0, 2))
    sum_masked, cnt_pos, sum_abs = sums[0], sums[1], sums[2]
    masked_mean = sum_masked / cnt_pos   # NaN if no positive weights (matches torch)
    return jnp.where(sum_abs > 0.0, masked_mean, jnp.float32(0.0))


def _reference(pred, target, weights):
    scale = weights * (pred - target) ** 2
    if jnp.count_nonzero(scale) != 0:
        return jnp.mean(scale[weights > 0])
    return jnp.mean(scale)


if __name__ == "__main__":
    key = jax.random.PRNGKey(0)
    k1, k2, k3 = jax.random.split(key, 3)

    # LSD prediction/target/weights: (batch, channels=6, H, W)
    shape = (2, 6, 16, 16)
    pred = jax.random.normal(k1, shape, dtype=jnp.float32)
    target = jax.random.normal(k2, shape, dtype=jnp.float32)
    raw_w = jax.random.uniform(k3, shape, dtype=jnp.float32)
    weights = jnp.where(raw_w > 0.3, raw_w, 0.0)   # non-negative, some exact zeros

    loss = weighted_mse_loss(pred, target, weights)
    jax.block_until_ready(loss)
    ref = _reference(pred, target, weights)
    assert jnp.allclose(loss, ref, rtol=1e-5, atol=1e-5), (loss, ref)

    # Multi-block path with a ragged tail block (exercises the pl.when-gated
    # row mask; on 2-core chips also a clamped/skipped phantom block).
    shape2 = (2, 6, 24, 32)
    p2 = jax.random.normal(k1, shape2, dtype=jnp.float32)
    t2 = jax.random.normal(k2, shape2, dtype=jnp.float32)
    u2 = jax.random.uniform(k3, shape2, dtype=jnp.float32)
    w2 = jnp.where(u2 > 0.3, u2, 0.0)
    loss2 = weighted_mse_loss(p2, t2, w2, block_rows=32)
    jax.block_until_ready(loss2)
    ref2 = _reference(p2, t2, w2)
    assert jnp.allclose(loss2, ref2, rtol=1e-5, atol=1e-5), (loss2, ref2)

    # Multi-block, block-aligned path (no tail mask anywhere).
    shape3 = (4, 6, 32, 32)
    p3 = jax.random.normal(k1, shape3, dtype=jnp.float32)
    t3 = jax.random.normal(k2, shape3, dtype=jnp.float32)
    u3 = jax.random.uniform(k3, shape3, dtype=jnp.float32)
    w3 = jnp.where(u3 > 0.3, u3, 0.0)
    loss3 = weighted_mse_loss(p3, t3, w3, block_rows=64)
    jax.block_until_ready(loss3)
    ref3 = _reference(p3, t3, w3)
    assert jnp.allclose(loss3, ref3, rtol=1e-5, atol=1e-5), (loss3, ref3)

    # Degenerate all-zero branch (mean over all elements == 0).
    zeros = jnp.zeros(shape, jnp.float32)
    loss0 = weighted_mse_loss(zeros, zeros, zeros)
    jax.block_until_ready(loss0)
    assert jnp.allclose(loss0, 0.0)

    # Lane-ragged element count -> fused XLA fallback path.
    shape4 = (2, 6, 15, 15)
    p4 = jax.random.normal(k1, shape4, dtype=jnp.float32)
    t4 = jax.random.normal(k2, shape4, dtype=jnp.float32)
    u4 = jax.random.uniform(k3, shape4, dtype=jnp.float32)
    w4 = jnp.where(u4 > 0.3, u4, 0.0)
    loss4 = weighted_mse_loss(p4, t4, w4)
    jax.block_until_ready(loss4)
    ref4 = _reference(p4, t4, w4)
    assert jnp.allclose(loss4, ref4, rtol=1e-5, atol=1e-5), (loss4, ref4)

    print("KERNEL_OK")
</pallas_src>

<mosaic_0001>
module attributes {stable_mosaic.version = 11 : i64} {
  func.func @_wmse_partials_kernel(%arg0: i32, %arg1: i32, %arg2: memref<24x128xf32, #tpu.memory_space<vmem>>, %arg3: memref<24x128xf32, #tpu.memory_space<vmem>>, %arg4: memref<24x128xf32, #tpu.memory_space<vmem>>, %arg5: memref<3x8x128xf32, #tpu.memory_space<vmem>>) attributes {dimension_semantics = [#tpu.dimension_semantics<parallel>, #tpu.dimension_semantics<arbitrary>], iteration_bounds = array<i64: 1, 1>, scalar_prefetch = 0 : i64, scratch_operands = 0 : i64, tpu.core_type = #tpu.core_type<tc>, window_params = [{transform_indices = @transform_0, window_bounds = array<i64: 24, 128>}, {transform_indices = @transform_1, window_bounds = array<i64: 24, 128>}, {transform_indices = @transform_2, window_bounds = array<i64: 24, 128>}, {transform_indices = @transform_3, window_bounds = array<i64: 3, 8, 128>}]} {
    %c0_i32 = arith.constant 0 : i32
    %0 = arith.cmpi eq, %arg1, %c0_i32 : i32
    %1 = arith.extui %0 : i1 to i32
    %c0_i32_0 = arith.constant 0 : i32
    %2 = arith.cmpi ne, %1, %c0_i32_0 : i32
    scf.if %2 {
      %cst_26 = arith.constant 0.000000e+00 : f32
      %40 = vector.broadcast %cst_26 : f32 to vector<3x8x128xf32>
      %c0_27 = arith.constant 0 : index
      %c0_28 = arith.constant 0 : index
      %c0_29 = arith.constant 0 : index
      %41 = vector.load %arg5[%c0_27, %c0_28, %c0_29] : memref<3x8x128xf32, #tpu.memory_space<vmem>>, vector<3x8x128xf32>
      tpu.vector_store %arg5[%c0_27, %c0_28, %c0_29], %40 {strides = array<i32>} : memref<3x8x128xf32, #tpu.memory_space<vmem>>, vector<3x8x128xf32>,
    } else {
    }
    %c0 = arith.constant 0 : index
    %c0_1 = arith.constant 0 : index
    %3 = vector.load %arg2[%c0, %c0_1] : memref<24x128xf32, #tpu.memory_space<vmem>>, vector<24x128xf32>
    %c0_2 = arith.constant 0 : index
    %c0_3 = arith.constant 0 : index
    %4 = vector.load %arg3[%c0_2, %c0_3] : memref<24x128xf32, #tpu.memory_space<vmem>>, vector<24x128xf32>
    %c0_4 = arith.constant 0 : index
    %c0_5 = arith.constant 0 : index
    %5 = vector.load %arg4[%c0_4, %c0_5] : memref<24x128xf32, #tpu.memory_space<vmem>>, vector<24x128xf32>
    %6 = arith.subf %3, %4 : vector<24x128xf32>
    %7 = arith.mulf %6, %6 : vector<24x128xf32>
    %8 = arith.mulf %5, %7 : vector<24x128xf32>
    %cst = arith.constant 0.000000e+00 : f32
    %9 = vector.broadcast %cst : f32 to vector<24x128xf32>
    %10 = arith.cmpf ogt, %5, %9 : vector<24x128xf32>
    %11 = math.absf %8 : vector<24x128xf32>
    %cst_6 = arith.constant 0.000000e+00 : f32
    %12 = vector.broadcast %cst_6 : f32 to vector<24x128xf32>
    %13 = arith.select %10, %8, %12 : vector<24x128xi1>, vector<24x128xf32>
    %c0_7 = arith.constant 0 : index
    %c0_8 = arith.constant 0 : index
    %c0_9 = arith.constant 0 : index
    %14 = vector.load %arg5[%c0_7, %c0_8, %c0_9] : memref<3x8x128xf32, #tpu.memory_space<vmem>>, vector<1x8x128xf32>
    %15 = vector.shape_cast %14 : vector<1x8x128xf32> to vector<8x128xf32>
    %16 = vector.shape_cast %13 : vector<24x128xf32> to vector<3x8x128xf32>
    %cst_10 = arith.constant dense<0.000000e+00> : vector<8x128xf32>
    %17 = vector.multi_reduction <add>, %16, %cst_10 [0] : vector<3x8x128xf32> to vector<8x128xf32>
    %18 = arith.addf %15, %17 : vector<8x128xf32>
    %c0_11 = arith.constant 0 : index
    %c0_12 = arith.constant 0 : index
    %c0_13 = arith.constant 0 : index
    %19 = vector.load %arg5[%c0_11, %c0_12, %c0_13] : memref<3x8x128xf32, #tpu.memory_space<vmem>>, vector<1x8x128xf32>
    %20 = vector.shape_cast %19 : vector<1x8x128xf32> to vector<8x128xf32>
    %21 = vector.shape_cast %18 : vector<8x128xf32> to vector<1x8x128xf32>
    tpu.vector_store %arg5[%c0_11, %c0_12, %c0_13], %21 {strides = array<i32>} : memref<3x8x128xf32, #tpu.memory_space<vmem>>, vector<1x8x128xf32>,
    %c1 = arith.constant 1 : index
    %c0_14 = arith.constant 0 : index
    %c0_15 = arith.constant 0 : index
    %22 = vector.load %arg5[%c1, %c0_14, %c0_15] : memref<3x8x128xf32, #tpu.memory_space<vmem>>, vector<1x8x128xf32>
    %23 = vector.shape_cast %22 : vector<1x8x128xf32> to vector<8x128xf32>
    %24 = arith.extui %10 : vector<24x128xi1> to vector<24x128xi32>
    %25 = arith.sitofp %24 : vector<24x128xi32> to vector<24x128xf32>
    %26 = vector.shape_cast %25 : vector<24x128xf32> to vector<3x8x128xf32>
    %cst_16 = arith.constant dense<0.000000e+00> : vector<8x128xf32>
    %27 = vector.multi_reduction <add>, %26, %cst_16 [0] : vector<3x8x128xf32> to vector<8x128xf32>
    %28 = arith.addf %23, %27 : vector<8x128xf32>
    %c1_17 = arith.constant 1 : index
    %c0_18 = arith.constant 0 : index
    %c0_19 = arith.constant 0 : index
    %29 = vector.load %arg5[%c1_17, %c0_18, %c0_19] : memref<3x8x128xf32, #tpu.memory_space<vmem>>, vector<1x8x128xf32>
    %30 = vector.shape_cast %29 : vector<1x8x128xf32> to vector<8x128xf32>
    %31 = vector.shape_cast %28 : vector<8x128xf32> to vector<1x8x128xf32>
    tpu.vector_store %arg5[%c1_17, %c0_18, %c0_19], %31 {strides = array<i32>} : memref<3x8x128xf32, #tpu.memory_space<vmem>>, vector<1x8x128xf32>,
    %c2 = arith.constant 2 : index
    %c0_20 = arith.constant 0 : index
    %c0_21 = arith.constant 0 : index
    %32 = vector.load %arg5[%c2, %c0_20, %c0_21] : memref<3x8x128xf32, #tpu.memory_space<vmem>>, vector<1x8x128xf32>
    %33 = vector.shape_cast %32 : vector<1x8x128xf32> to vector<8x128xf32>
    %34 = vector.shape_cast %11 : vector<24x128xf32> to vector<3x8x128xf32>
    %cst_22 = arith.constant dense<0.000000e+00> : vector<8x128xf32>
    %35 = vector.multi_reduction <add>, %34, %cst_22 [0] : vector<3x8x128xf32> to vector<8x128xf32>
    %36 = arith.addf %33, %35 : vector<8x128xf32>
    %c2_23 = arith.constant 2 : index
    %c0_24 = arith.constant 0 : index
    %c0_25 = arith.constant 0 : index
    %37 = vector.load %arg5[%c2_23, %c0_24, %c0_25] : memref<3x8x128xf32, #tpu.memory_space<vmem>>, vector<1x8x128xf32>
    %38 = vector.shape_cast %37 : vector<1x8x128xf32> to vector<8x128xf32>
    %39 = vector.shape_cast %36 : vector<8x128xf32> to vector<1x8x128xf32>
    tpu.vector_store %arg5[%c2_23, %c0_24, %c0_25], %39 {strides = array<i32>} : memref<3x8x128xf32, #tpu.memory_space<vmem>>, vector<1x8x128xf32>,
    return
  }
  func.func @transform_0(%arg0: i32, %arg1: i32) -> (i32, i32) {
    %c1_i32 = arith.constant 1 : i32
    %0 = arith.muli %arg0, %c1_i32 : i32
    %1 = arith.addi %0, %arg1 : i32
    %c0_i32 = arith.constant 0 : i32
    %c0_i32_0 = arith.constant 0 : i32
    return %1, %c0_i32 : i32, i32
  }
  func.func @transform_1(%arg0: i32, %arg1: i32) -> (i32, i32) {
    %c1_i32 = arith.constant 1 : i32
    %0 = arith.muli %arg0, %c1_i32 : i32
    %1 = arith.addi %0, %arg1 : i32
    %c0_i32 = arith.constant 0 : i32
    %c0_i32_0 = arith.constant 0 : i32
    return %1, %c0_i32 : i32, i32
  }
  func.func @transform_2(%arg0: i32, %arg1: i32) -> (i32, i32) {
    %c1_i32 = arith.constant 1 : i32
    %0 = arith.muli %arg0, %c1_i32 : i32
    %1 = arith.addi %0, %arg1 : i32
    %c0_i32 = arith.constant 0 : i32
    %c0_i32_0 = arith.constant 0 : i32
    return %1, %c0_i32 : i32, i32
  }
  func.func @transform_3(%arg0: i32, %arg1: i32) -> (i32, i32, i32) {
    %c0_i32 = arith.constant 0 : i32
    %c0_i32_0 = arith.constant 0 : i32
    %c0_i32_1 = arith.constant 0 : i32
    return %arg0, %c0_i32, %c0_i32_0 : i32, i32, i32
  }
}

</mosaic_0001>

<bundles_post_ra>
// kernel: weighted_mse_loss.1
= control target key start
LH: loop header
LB: loop body
LE: loop exit
PB: predicated region body
PF: predicated region fallthrough
CT: control target
= control target key end

     0   :  { %v167_v15 = vmov 0.0   ;;  %s224_s0 = inlined_call_operand.vmem [shape: f32[24,128], index: 0, kind: input, shape index: {}]   ;;  %s225_s1 = inlined_call_operand.vmem [shape: f32[24,128], index: 1, kind: input, shape index: {}]   ;;  %s226_s2 = inlined_call_operand.vmem [shape: f32[24,128], index: 2, kind: input, shape index: {}]   ;;  %s227_s3 = inlined_call_operand.vmem [shape: f32[3,8,128], index: 3, kind: output, shape index: {}]  }
   0x1   :  { %v87_v0 = vld [vmem:[%s224_s0] sm:$0xff]  ;;  %v88_v1 = vld [vmem:[%s224_s0 + $0x8] sm:$0xff]  ;;  %v89_v2 = vld [vmem:[%s224_s0 + $0x10] sm:$0xff] }
   0x2   :  { %v90_v3 = vld [vmem:[%s225_s1] sm:$0xff]  ;;  %v91_v4 = vld [vmem:[%s225_s1 + $0x8] sm:$0xff]  ;;  %v92_v5 = vld [vmem:[%s225_s1 + $0x10] sm:$0xff] }
   0x3   :  { %v93_v6 = vld [vmem:[%s226_s2] sm:$0xff]  ;;  %v94_v7 = vld [vmem:[%s226_s2 + $0x8] sm:$0xff]  ;;  %v95_v8 = vld [vmem:[%s226_s2 + $0x10] sm:$0xff]  ;;  %v96_v9 = vsub.f32 %v87_v0, %v90_v3  ;;  %v97_v10 = vsub.f32 %v88_v1, %v91_v4  ;;  %v98_v11 = vsub.f32 %v89_v2, %v92_v5 }
   0x4   :  { %vm105_vm0 = vcmp.gt.f32.partialorder %v93_v6, 0.0  ;;  %vm106_vm1 = vcmp.gt.f32.partialorder %v94_v7, 0.0  ;;  %vm107_vm2 = vcmp.gt.f32.partialorder %v95_v8, 0.0 }
   0x5   :  { %v99_v12 = vmul.f32 %v96_v9, %v96_v9  ;;  %v100_v13 = vmul.f32 %v97_v10, %v97_v10  ;;  %v101_v14 = vmul.f32 %v98_v11, %v98_v11  ;;  %v160_v16 = vsel %vm105_vm0, 1.0, %v167_v15 }
   0x6   :  { %v161_v17 = vsel %vm106_vm1, 1.0, %v167_v15  ;;  %v162_v18 = vsel %vm107_vm2, 1.0, %v167_v15 }
   0x7   :  { %v102_v19 = vmul.f32 %v99_v12, %v93_v6  ;;  %v103_v20 = vmul.f32 %v100_v13, %v94_v7  ;;  %v104_v21 = vmul.f32 %v101_v14, %v95_v8  ;;  %v127_v22 = vadd.f32 %v161_v17, %v160_v16 }
   0x9   :  { %v111_v23 = vsel %vm105_vm0, %v102_v19, 0.0  ;;  %v112_v24 = vsel %vm106_vm1, %v103_v20, 0.0  ;;  %v113_v25 = vsel %vm107_vm2, %v104_v21, 0.0  ;;  %v128_v26 = vadd.f32 %v162_v18, %v127_v22 }
   0xa   :  { %v115_v27 = vadd.f32 %v112_v24, %v111_v23  ;;  %v108_v28 = vand.u32 2147483647, %v102_v19  ;;  %v109_v29 = vand.u32 2147483647, %v103_v20  ;;  %v110_v30 = vand.u32 2147483647, %v104_v21 }
   0xb   :  { %163 = vst [vmem:[%s227_s3 + $0x8] sm:$0xff] %v128_v26 }
   0xc   :  { %v116_v31 = vadd.f32 %v115_v27, %v113_v25  ;;  %v133_v32 = vadd.f32 %v109_v29, %v108_v28 }
   0xe   :  { %v134_v33 = vadd.f32 %v133_v32, %v110_v30  ;;  %118 = vst [vmem:[%s227_s3] sm:$0xff] %v116_v31 }
  0x10   :  { %165 = vst [vmem:[%s227_s3 + $0x10] sm:$0xff] %v134_v33 }

</bundles_post_ra>
